<compile_context>
chip_gen: v5e
topology: v5e:2x2
jax: 0.10.0
libtpu: 0.0.40
codegen_flags: <defaults>
</compile_context>

<pallas_src>
import functools

import jax
import jax.numpy as jnp
from jax.experimental import pallas as pl
from jax.experimental.pallas import tpu as pltpu


def _round_up(x, m):
    return ((x + m - 1) // m) * m


def _mlp_kernel(xT_ref, w1_ref, b1_ref, w2_ref, b2_ref, w3_ref, b3_ref, out_ref,
                *, final_reduce):
    """One batch tile (batch on lanes) of sigmoid(W3 relu(W2 relu(W1 x + b1) + b2) + b3)."""
    xT = xT_ref[...]                                            # (in, tm)

    # Layers 1/2: MXU matmuls with f32 accumulation; bias add / ReLU on the VPU.
    z1 = jnp.dot(w1_ref[...], xT, preferred_element_type=jnp.float32) + b1_ref[...]
    a1 = jnp.maximum(z1, 0.0)                                   # (h1, tm) f32

    z2 = (jnp.dot(w2_ref[...], a1.astype(w2_ref.dtype),
                  preferred_element_type=jnp.float32) + b2_ref[...])
    a2 = jnp.maximum(z2, 0.0)                                   # (h2, tm) f32

    if final_reduce:
        # output_size == 1: an M=1 MXU matmul is <1% utilized, so compute it
        # as a VPU multiply + XLU sublane reduction.  w3_ref is (h2, 1).
        z3 = jnp.sum(a2 * w3_ref[...], axis=0, keepdims=True) + b3_ref[...]
    else:
        z3 = (jnp.dot(w3_ref[...], a2.astype(w3_ref.dtype),
                      preferred_element_type=jnp.float32) + b3_ref[...])

    # Sigmoid: exp and approximate reciprocal both run in the EUP slot.
    out_ref[...] = pl.reciprocal(1.0 + jnp.exp(-z3), approx=True).astype(out_ref.dtype)


@functools.partial(jax.jit, static_argnames=("block_m", "compute_dtype"))
def nn_forward(x, w1, b1, w2, b2, w3, b3, *, block_m=512,
               compute_dtype=jnp.bfloat16):
    """Forward pass of NN_torch.

    x: (B, input_size).  w_i are PyTorch-layout (out, in); b_i are (out,).
    Returns (B, output_size) float32.
    """
    B, in_size = x.shape
    out_size = w3.shape[0]
    final_reduce = out_size == 1

    # Batch lives on the lane axis inside the kernel: present x as
    # (features, batch) and pad the batch to a multiple of the lane tile.
    tm = min(_round_up(block_m, 128), _round_up(B, 128))
    b_pad = _round_up(B, tm)
    xT = jnp.transpose(x).astype(compute_dtype)
    if b_pad != B:
        xT = jnp.pad(xT, ((0, 0), (0, b_pad - B)))

    # MXU operand dtype; accumulation and all elementwise math remain f32.
    w1c = w1.astype(compute_dtype)
    w2c = w2.astype(compute_dtype)
    b1c = b1.reshape(-1, 1).astype(jnp.float32)
    b2c = b2.reshape(-1, 1).astype(jnp.float32)
    b3c = b3.reshape(-1, 1).astype(jnp.float32)
    if final_reduce:
        # (h2, 1) f32 column for the VPU/XLU reduction path.
        w3c = jnp.transpose(w3).astype(jnp.float32)
    else:
        w3c = w3.astype(compute_dtype)

    grid = (b_pad // tm,)

    def resident(arr):
        # Full-array block with a constant block index -> stays resident in VMEM.
        return pl.BlockSpec(arr.shape, lambda i: (0, 0))

    out = pl.pallas_call(
        functools.partial(_mlp_kernel, final_reduce=final_reduce),
        out_shape=jax.ShapeDtypeStruct((out_size, b_pad), jnp.float32),
        grid_spec=pltpu.PrefetchScalarGridSpec(
            num_scalar_prefetch=0,
            grid=grid,
            in_specs=[
                pl.BlockSpec((in_size, tm), lambda i: (0, i)),  # x^T: tiled over batch lanes
                resident(w1c), resident(b1c),
                resident(w2c), resident(b2c),
                resident(w3c), resident(b3c),
            ],
            out_specs=pl.BlockSpec((out_size, tm), lambda i: (0, i)),
        ),
        compiler_params=pltpu.CompilerParams(
            # Batch tiles are independent -> shard across TensorCores on v7x.
            dimension_semantics=("parallel",),
        ),
    )(xT, w1c, b1c, w2c, b2c, w3c, b3c)

    # Back to the PyTorch (batch, out) layout; drop batch padding.
    return jnp.transpose(out[:, :B])


def init_linear_params(key, in_features, out_features):
    """Deterministic PyTorch-style Linear init: U(-1/sqrt(in), 1/sqrt(in)).

    Returns weight in PyTorch layout (out, in) and bias (out,).
    """
    kw, kb = jax.random.split(key)
    bound = 1.0 / jnp.sqrt(jnp.asarray(in_features, jnp.float32))
    w = jax.random.uniform(kw, (out_features, in_features), jnp.float32,
                           minval=-bound, maxval=bound)
    b = jax.random.uniform(kb, (out_features,), jnp.float32,
                           minval=-bound, maxval=bound)
    return w, b


def reference_forward(x, w1, b1, w2, b2, w3, b3):
    a1 = jnp.maximum(x @ w1.T + b1, 0.0)
    a2 = jnp.maximum(a1 @ w2.T + b2, 0.0)
    return jax.nn.sigmoid(a2 @ w3.T + b3)


if __name__ == "__main__":
    # NN_torch(input_size, hidden1_size, hidden2_size, output_size)
    batch = 256            # small but enough rows to exercise the batch grid
    input_size = 4
    hidden1_size = 32
    hidden2_size = 16
    output_size = 1

    key = jax.random.PRNGKey(0)
    kx, k1, k2, k3 = jax.random.split(key, 4)

    x = jax.random.normal(kx, (batch, input_size), jnp.float32)
    w1, b1 = init_linear_params(k1, input_size, hidden1_size)
    w2, b2 = init_linear_params(k2, hidden1_size, hidden2_size)
    w3, b3 = init_linear_params(k3, hidden2_size, output_size)

    ref = reference_forward(x, w1, b1, w2, b2, w3, b3)

    # Exact-math path (f32 MXU operands) with a 2-step batch grid (tm=128);
    # tolerance covers the EUP approximate reciprocal used in the sigmoid.
    out_f32 = jax.block_until_ready(
        nn_forward(x, w1, b1, w2, b2, w3, b3, block_m=128,
                   compute_dtype=jnp.float32))
    assert out_f32.shape == (batch, output_size)
    assert jnp.allclose(out_f32, ref, atol=2e-3, rtol=2e-3), "f32 mismatch vs reference"

    # Default performance path (bf16 MXU operands, f32 accumulate, single 256-lane tile).
    out_bf16 = jax.block_until_ready(nn_forward(x, w1, b1, w2, b2, w3, b3))
    assert out_bf16.shape == (batch, output_size)
    assert jnp.allclose(out_bf16, ref, atol=3e-2, rtol=3e-2), "bf16 mismatch vs reference"

    print("KERNEL_OK")
</pallas_src>

<mosaic_0001>
module attributes {stable_mosaic.version = 11 : i64} {
  func.func @_mlp_kernel(%arg0: i32, %arg1: memref<4x128xf32, #tpu.memory_space<vmem>>, %arg2: memref<32x4xf32, #tpu.memory_space<vmem>>, %arg3: memref<32x1xf32, #tpu.memory_space<vmem>>, %arg4: memref<16x32xf32, #tpu.memory_space<vmem>>, %arg5: memref<16x1xf32, #tpu.memory_space<vmem>>, %arg6: memref<16x1xf32, #tpu.memory_space<vmem>>, %arg7: memref<1x1xf32, #tpu.memory_space<vmem>>, %arg8: memref<1x128xf32, #tpu.memory_space<vmem>>) attributes {dimension_semantics = [#tpu.dimension_semantics<parallel>], iteration_bounds = array<i64: 2>, scalar_prefetch = 0 : i64, scratch_operands = 0 : i64, tpu.core_type = #tpu.core_type<tc>, window_params = [{transform_indices = @transform_0, window_bounds = array<i64: 4, 128>}, {pipeline_mode = #tpu.pipeline_mode<synchronous>, transform_indices = @transform_1, window_bounds = array<i64: 32, 4>}, {pipeline_mode = #tpu.pipeline_mode<synchronous>, transform_indices = @transform_2, window_bounds = array<i64: 32, 1>}, {pipeline_mode = #tpu.pipeline_mode<synchronous>, transform_indices = @transform_3, window_bounds = array<i64: 16, 32>}, {pipeline_mode = #tpu.pipeline_mode<synchronous>, transform_indices = @transform_4, window_bounds = array<i64: 16, 1>}, {pipeline_mode = #tpu.pipeline_mode<synchronous>, transform_indices = @transform_5, window_bounds = array<i64: 16, 1>}, {pipeline_mode = #tpu.pipeline_mode<synchronous>, transform_indices = @transform_6, window_bounds = array<i64: 1, 1>}, {transform_indices = @transform_7, window_bounds = array<i64: 1, 128>}]} {
    %c0 = arith.constant 0 : index
    %c0_0 = arith.constant 0 : index
    %0 = vector.load %arg1[%c0, %c0_0] : memref<4x128xf32, #tpu.memory_space<vmem>>, vector<4x128xf32>
    %c0_1 = arith.constant 0 : index
    %c0_2 = arith.constant 0 : index
    %1 = vector.load %arg2[%c0_1, %c0_2] : memref<32x4xf32, #tpu.memory_space<vmem>>, vector<32x4xf32>
    %cst = arith.constant dense<0.000000e+00> : vector<32x128xf32>
    %2 = tpu.matmul %1, %0, %cst {dimension_numbers = #tpu.dot_dimension_numbers<[1], [0], [0], [1], [0, 0, 1, 1], [], []>} : vector<32x4xf32>, vector<4x128xf32>, vector<32x128xf32> -> vector<32x128xf32>
    %c0_3 = arith.constant 0 : index
    %c0_4 = arith.constant 0 : index
    %3 = vector.load %arg3[%c0_3, %c0_4] : memref<32x1xf32, #tpu.memory_space<vmem>>, vector<32x1xf32>
    %4 = vector.broadcast %3 : vector<32x1xf32> to vector<32x128xf32>
    %5 = arith.addf %2, %4 : vector<32x128xf32>
    %cst_5 = arith.constant 0.000000e+00 : f32
    %6 = vector.broadcast %cst_5 : f32 to vector<32x128xf32>
    %7 = arith.maximumf %5, %6 : vector<32x128xf32>
    %c0_6 = arith.constant 0 : index
    %c0_7 = arith.constant 0 : index
    %8 = vector.load %arg4[%c0_6, %c0_7] : memref<16x32xf32, #tpu.memory_space<vmem>>, vector<16x32xf32>
    %cst_8 = arith.constant dense<0.000000e+00> : vector<16x128xf32>
    %9 = tpu.matmul %8, %7, %cst_8 {dimension_numbers = #tpu.dot_dimension_numbers<[1], [0], [0], [1], [0, 0, 1, 1], [], []>} : vector<16x32xf32>, vector<32x128xf32>, vector<16x128xf32> -> vector<16x128xf32>
    %c0_9 = arith.constant 0 : index
    %c0_10 = arith.constant 0 : index
    %10 = vector.load %arg5[%c0_9, %c0_10] : memref<16x1xf32, #tpu.memory_space<vmem>>, vector<16x1xf32>
    %11 = vector.broadcast %10 : vector<16x1xf32> to vector<16x128xf32>
    %12 = arith.addf %9, %11 : vector<16x128xf32>
    %cst_11 = arith.constant 0.000000e+00 : f32
    %13 = vector.broadcast %cst_11 : f32 to vector<16x128xf32>
    %14 = arith.maximumf %12, %13 : vector<16x128xf32>
    %c0_12 = arith.constant 0 : index
    %c0_13 = arith.constant 0 : index
    %15 = vector.load %arg6[%c0_12, %c0_13] : memref<16x1xf32, #tpu.memory_space<vmem>>, vector<16x1xf32>
    %16 = vector.broadcast %15 : vector<16x1xf32> to vector<16x128xf32>
    %17 = arith.mulf %14, %16 : vector<16x128xf32>
    %cst_14 = arith.constant dense<0.000000e+00> : vector<128xf32>
    %18 = vector.multi_reduction <add>, %17, %cst_14 [0] : vector<16x128xf32> to vector<128xf32>
    %19 = vector.shape_cast %18 : vector<128xf32> to vector<1x128xf32>
    %c0_15 = arith.constant 0 : index
    %c0_16 = arith.constant 0 : index
    %20 = vector.load %arg7[%c0_15, %c0_16] : memref<1x1xf32, #tpu.memory_space<vmem>>, vector<1x1xf32>
    %21 = vector.broadcast %20 : vector<1x1xf32> to vector<1x128xf32>
    %22 = arith.addf %19, %21 : vector<1x128xf32>
    %cst_17 = arith.constant 0.000000e+00 : f32
    %23 = vector.broadcast %cst_17 : f32 to vector<1x128xf32>
    %24 = arith.subf %23, %22 : vector<1x128xf32>
    %25 = math.exp %24 : vector<1x128xf32>
    %cst_18 = arith.constant 1.000000e+00 : f32
    %26 = vector.broadcast %cst_18 : f32 to vector<1x128xf32>
    %27 = arith.addf %26, %25 : vector<1x128xf32>
    %28 = tpu.reciprocal %27 {approx = true} : vector<1x128xf32> -> vector<1x128xf32>
    %c0_19 = arith.constant 0 : index
    %c0_20 = arith.constant 0 : index
    %29 = vector.load %arg8[%c0_19, %c0_20] : memref<1x128xf32, #tpu.memory_space<vmem>>, vector<1x128xf32>
    tpu.vector_store %arg8[%c0_19, %c0_20], %28 {strides = array<i32>} : memref<1x128xf32, #tpu.memory_space<vmem>>, vector<1x128xf32>,
    return
  }
  func.func @transform_0(%arg0: i32) -> (i32, i32) {
    %c0_i32 = arith.constant 0 : i32
    %c0_i32_0 = arith.constant 0 : i32
    return %c0_i32, %arg0 : i32, i32
  }
  func.func @transform_1(%arg0: i32) -> (i32, i32) {
    %c0_i32 = arith.constant 0 : i32
    %c0_i32_0 = arith.constant 0 : i32
    %c0_i32_1 = arith.constant 0 : i32
    return %c0_i32, %c0_i32_0 : i32, i32
  }
  func.func @transform_2(%arg0: i32) -> (i32, i32) {
    %c0_i32 = arith.constant 0 : i32
    %c0_i32_0 = arith.constant 0 : i32
    %c0_i32_1 = arith.constant 0 : i32
    return %c0_i32, %c0_i32_0 : i32, i32
  }
  func.func @transform_3(%arg0: i32) -> (i32, i32) {
    %c0_i32 = arith.constant 0 : i32
    %c0_i32_0 = arith.constant 0 : i32
    %c0_i32_1 = arith.constant 0 : i32
    return %c0_i32, %c0_i32_0 : i32, i32
  }
  func.func @transform_4(%arg0: i32) -> (i32, i32) {
    %c0_i32 = arith.constant 0 : i32
    %c0_i32_0 = arith.constant 0 : i32
    %c0_i32_1 = arith.constant 0 : i32
    return %c0_i32, %c0_i32_0 : i32, i32
  }
  func.func @transform_5(%arg0: i32) -> (i32, i32) {
    %c0_i32 = arith.constant 0 : i32
    %c0_i32_0 = arith.constant 0 : i32
    %c0_i32_1 = arith.constant 0 : i32
    return %c0_i32, %c0_i32_0 : i32, i32
  }
  func.func @transform_6(%arg0: i32) -> (i32, i32) {
    %c0_i32 = arith.constant 0 : i32
    %c0_i32_0 = arith.constant 0 : i32
    %c0_i32_1 = arith.constant 0 : i32
    return %c0_i32, %c0_i32_0 : i32, i32
  }
  func.func @transform_7(%arg0: i32) -> (i32, i32) {
    %c0_i32 = arith.constant 0 : i32
    %c0_i32_0 = arith.constant 0 : i32
    return %c0_i32, %arg0 : i32, i32
  }
}

</mosaic_0001>

<bundles_post_ra>
// kernel: nn_forward.1
= control target key start
LH: loop header
LB: loop body
LE: loop exit
PB: predicated region body
PF: predicated region fallthrough
CT: control target
= control target key end

     0   :  { %s808_s0 = inlined_call_operand.vmem [shape: f32[4,256], index: 0, kind: input, shape index: {}]   ;;  %s809_s1 = inlined_call_operand.vmem [shape: f32[32,4], index: 1, kind: input, shape index: {}]   ;;  %s810_s2 = inlined_call_operand.vmem [shape: f32[32,1], index: 2, kind: input, shape index: {}]   ;;  %s811_s3 = inlined_call_operand.vmem [shape: f32[16,32], index: 3, kind: input, shape index: {}]   ;;  %s812_s4 = inlined_call_operand.vmem [shape: f32[16,1], index: 4, kind: input, shape index: {}]   ;;  %s813_s5 = inlined_call_operand.vmem [shape: f32[16,1], index: 5, kind: input, shape index: {}]   ;;  %s814_s6 = inlined_call_operand.<no memory space> [shape: f32[1,1], index: 6, kind: input, shape index: {}]   ;;  %s815_s7 = inlined_call_operand.hbm [shape: f32[1,256], index: 7, kind: output, shape index: {}]  }
   0x1   :  { %v12_v0 = vstv %s814_s6 }
   0x2   :  { %13 = vst [vmem:[#allocation2] sm:$0x1] %v12_v0 }
   0x3   :  { %14 = vsyncpa [#allocation4], 0 }
   0x4   :  { %16 = vsyncpa [#allocation4 + $0x1], 0  ;;  %s677_s26 = smov 0   ;;  %s679_s27 = smov 0  }
   0x5   :  { %s681_s28 = smov 0   ;;  %s683_s29 = smov 0  }
   0x6 LB: > { %s698_s6 = sadd.s32 4294967295, %s631_s29   ;;  %s503_s30 = sadd.s32 4294967294, %s631_s29   ;;  %s631_s29 = sphi %s683_s29, %s821_s29   ;;  %s627_s28 = sphi %s681_s28, %s820_s28   ;;  %s623_s27 = sphi %s679_s27, %s819_s27   ;;  %s619_s26 = sphi %s677_s26, %s818_s26  }
   0x7   : > { %s702_s8 = sadd.s32 1, %s631_s29   ;;  %s181_s9 = sadd.s32 1, %s627_s28 }
   0x8   : > { %s178_s10 = ssub.s32 %s631_s29, %s702_s8  ;;  %p191_p0 = scmp.ne.s32.totalorder %s627_s28, %s623_s27 }
   0x9   : > { %p179_p1 = scmp.eq.s32.totalorder %s178_s10, 0  ;;  %p192_p2 = scmp.eq.s32.totalorder %s698_s6, 1 }
   0xa   : > { %p197_p3 = scmp.ne.s32.totalorder %s623_s27, %s619_s26  ;;  %p198_p4 = scmp.eq.s32.totalorder %s503_s30, 1 }
   0xb   : > { %s713_s11 = scalar_select %p179_p1, %s627_s28, %s181_s9  }
   0xc   : > { %p715_p5 = por %p192_p2, %p191_p0  ;;  %p719_p6 = por %p198_p4, %p197_p3 }
   0xd   : > { %p506_p7 = scmp.ge.s32.totalorder %s631_s29, 1  ;;  %p241_p8 = scmp.lt.s32.totalorder %s631_s29, 3 }
   0xf   : > { %p242_p9 = pnand %p506_p7, %p241_p8 }
  0x10   : > { %p271_p10 = scmp.lt.s32.totalorder (!%p242_p9), %s698_s6, 1  ;;  %s269_s17 = sand.u32 (!%p242_p9), 1, %s623_s27  }
  0x11   : > { %245 = sbr.rel (%p242_p9) target bundleno = 356 (0x164), region = 48  ;;  %s444_s20 = scalar_lea.hbm (!%p242_p9), %s815_s7, %s698_s6 }
  0x12   : > { %s270_s21 = scalar_lea.vmem (!%p242_p9), [#allocation3], %s269_s17  ;;  %s448_s23 = sshll.u32 (!%p242_p9), %s444_s20, 4  ;;  %s449_s23 = int_to_ptr.hbm [resolvable:$true] %s448_s23 }
  0x13   : > { %s436_s24 = scalar_lea.sflag (!%p242_p9), [#allocation4], %s269_s17  ;;  %s583_s25 = sshra.s32 (!%p242_p9), %s449_s23, 4  ;;  %s584_s25 = int_to_ptr.hbm [resolvable:$true] %s583_s25 }
  0x14   : > { %s585_s30 = scalar_lea.hbm (!%p242_p9), %s584_s25, 1  ;;  %p590_p0 = scmp.lt.s32.totalorder (!%p242_p9), %s584_s25, %s815_s7 }
  0x15   : > { %p586_p11 = scmp.ne.s32.totalorder (!%p242_p9), %s584_s25, %s585_s30 }
  0x16   : > { %v283_v1 = vld [vmem:[%s810_s2 + $0x18] sm:$0xff]  ;;  %v633_v2 = vmov 0   ;;  %v281_v3 = vld [vmem:[%s810_s2 + $0x8] sm:$0xff]  ;;  %s272_s18 = scalar_select %p271_p10, %s698_s6, 1  ;;  %vm317_vm0 = vcmask 1043456   ;;  %v278_v4 = vld [vmem:[%s809_s1 + $0x10] sm:$0xff] }
  0x17   : > { %562 = vset.pattern.permute.xlu0 %v633_v2  ;;  %563 = vset.pattern.permute.xlu1 %v633_v2  ;;  %vm304_vm1 = vcmask 31744   ;;  %v276_v5 = vld [vmem:[%s809_s1] sm:$0xff]  ;;  %v282_v7 = vld [vmem:[%s810_s2 + $0x10] sm:$0xff]  ;;  %v279_v9 = vld [vmem:[%s809_s1 + $0x18] sm:$0xff]  ;;  %vm368_vm2 = vcmask 261120   ;;  %p587_p12 = pnand %p586_p11, %p715_p5  ;;  %s589_s6 = scalar_lea.hbm %s815_s7, 2 }
  0x18   : > { %301 = vperm.xlu0 %562, %v283_v1   ;;  %291 = vperm.xlu1 %563, %v281_v3   ;;  %s507_s19 = sshll.u32 %s272_s18, 2  ;;  %v280_v8 = vld [vmem:[%s810_s2] sm:$0xff]  ;;  %v277_v10 = vld [vmem:[%s809_s1 + $0x8] sm:$0xff]  ;;  %p591_p1 = scmp.lt.s32.totalorder %s589_s6, %s585_s30 }
  0x19   : > { %564 = vset.pattern.permute.xlu2 %v633_v2  ;;  %s274_s22 = scalar_lea.vmem %s808_s0, %s507_s19  ;;  %v400_v11 = vld [vmem:[%s813_s5] sm:$0xff]  ;;  %v401_v12 = vld [vmem:[%s813_s5 + $0x8] sm:$0xff]  ;;  %p588_p13 = pneg %p587_p12 }
  0x1a   : > { %v275_v6 = vld [vmem:[%s274_s22] sm:$0xf]  ;;  %v357_v14 = vld [vmem:[%s812_s4 + $0x8] sm:$0xff]  ;;  %s446_s22 = sshll.u32 %s270_s21, 4  ;;  %p592_p2 = por %p591_p1, %p590_p0  ;;  %s447_s22 = int_to_ptr.vmem [resolvable:$true] %s446_s22 }
  0x1b   : > { %517 = vmatpush.msk.msra.mxu2 %vm317_vm0, %v275_v6  ;;  %508 = vmatpush.msk.msra.mxu0 %vm317_vm0, %v275_v6  ;;  %v356_v13 = vld [vmem:[%s812_s4] sm:$0xff]  ;;  %v355_v33 = vld [vmem:[%s811_s3 + $0x8] sm:$0xff] }
  0x1c   : > { %511 = vmatmul.msk.f32.vlgmr.msra.gmra.mxu2 %vm304_vm1, %v278_v4  ;;  %509 = vmatmul.msk.f32.vlgmr.msra.gmra.mxu0 %vm304_vm1, %v276_v5  ;;  %v421_v19 = vld [vmem:[#allocation2] sm:$0x1]  ;;  %p593_p3 = pnand %p592_p2, %p588_p13 }
  0x1d   : > { %360 = vperm.xlu2 %564, %v356_v13   ;;  %v354_v32 = vld [vmem:[%s811_s3] sm:$0xff] }
  0x20   : > { %296 = vperm.xlu0 %562, %v282_v7   ;;  %286 = vperm.xlu1 %563, %v280_v8  }
  0x24   : > { %512 = vmatmul.msk.f32.gmra.mxu2 %vm304_vm1, %v279_v9  ;;  %510 = vmatmul.msk.f32.gmra.mxu0 %vm304_vm1, %v277_v10 }
  0x25   : > { %365 = vperm.xlu2 %564, %v357_v14  }
  0x28   : > { %404 = vperm.xlu0 %562, %v400_v11   ;;  %409 = vperm.xlu1 %563, %v401_v12  }
  0x2d   : > { %424 = vperm.xlu2 %564, %v421_v19  }
  0x77   : > { %v361_v34 = vpop.permute.xlu2 %360 }
  0x7f   : > { %v366_v37 = vpop.permute.xlu2 %365 }
  0x87   : > { %v425_v51 = vpop.permute.xlu2 %424 }
  0x88   : > { %v427_v53 = vperm.slane %v425_v51, 0 }
  0x8a   : > { %v302_v15 = vpop.permute.xlu0 %301  ;;  %v292_v18 = vpop.permute.xlu1 %291 }
  0x92   : > { %v297_v20 = vpop.permute.xlu0 %296  ;;  %v287_v27 = vpop.permute.xlu1 %286 }
  0x99   : > { %v338_v16 = vpop.f32.mrf.mxu0 }
  0x9a   : > { %v339_v28 = vadd.f32 %v338_v16, %v287_v27  ;;  %v405_v42 = vpop.permute.xlu0 %404  ;;  %v410_v43 = vpop.permute.xlu1 %409 }
  0x9c   : > { %v350_v31 = vmax.f32 %v339_v28, 0.0 }
  0x9f   : > { %v344_v17 = vpop.f32.mrf.mxu2 }
  0xa0   : > { %v345_v23 = vadd.f32 %v344_v17, %v297_v20 }
  0xa1   : > { %v341_v21 = vpop.f32.mrf.mxu0 }
  0xa2   : > { %v342_v25 = vadd.f32 %v341_v21, %v292_v18  ;;  %v352_v29 = vmax.f32 %v345_v23, 0.0 }
  0xa4   : > { %v351_v30 = vmax.f32 %v342_v25, 0.0 }
  0xa7   : > { %v347_v22 = vpop.f32.mrf.mxu2 }
  0xa8   : > { %v348_v24 = vadd.f32 %v347_v22, %v302_v15 }
  0xaa   : > { %v353_v26 = vmax.f32 %v348_v24, 0.0 }
  0xac   : > { %387 = vmatpush.msra.mxu1 %v353_v26  ;;  %518 = vmatpush.msra.mxu3 %v353_v26 }
  0xae   : > { %388 = vmatpush.msra.mxu1 %v352_v29  ;;  %519 = vmatpush.msra.mxu3 %v352_v29 }
  0xb0   : > { %389 = vmatpush.msra.mxu1 %v351_v30  ;;  %520 = vmatpush.msra.mxu3 %v351_v30 }
  0xb2   : > { %390 = vmatpush.msra.mxu1 %v350_v31  ;;  %521 = vmatpush.msra.mxu3 %v350_v31 }
  0xb3   : > { %513 = vmatmul.msk.f32.vlgmr.msra.gmra.mxu1 %vm368_vm2, %v354_v32  ;;  %514 = vmatmul.msk.f32.vlgmr.msra.gmra.mxu3 %vm368_vm2, %v355_v33 }
 0x130   : > { %v392_v35 = vpop.f32.mrf.mxu1 }
 0x131   : > { %v393_v36 = vadd.f32 %v392_v35, %v361_v34 }
 0x133   : > { %v398_v39 = vmax.f32 %v393_v36, 0.0 }
 0x135   : > { %v412_v44 = vmul.f32 %v405_v42, %v398_v39 }
 0x136   : > { %v395_v38 = vpop.f32.mrf.mxu3 }
 0x137   : > { %v396_v40 = vadd.f32 %v395_v38, %v366_v37 }
 0x139   : > { %v399_v41 = vmax.f32 %v396_v40, 0.0 }
 0x13b   : > { %v413_v45 = vmul.f32 %v410_v43, %v399_v41 }
 0x13d   : > { %v414_v46 = vadd.f32 %v413_v45, %v412_v44 }
 0x13f   : > { %v415_v47 = vrot.slane %v414_v46, 4 }
 0x141   : > { %v416_v48 = vadd.f32 %v415_v47, %v414_v46 }
 0x143   : > { %v417_v49 = vrot.slane %v416_v48, 2 }
 0x145   : > { %v418_v50 = vadd.f32 %v417_v49, %v416_v48 }
 0x147   : > { %v419_v52 = vrot.slane %v418_v50, 1 }
 0x149   : > { %v420_v54 = vadd.f32 %v419_v52, %v418_v50 }
 0x14b   : > { %v428_v55 = vadd.f32 %v427_v53, %v420_v54 }
 0x14d   : > { %v429_v56 = vsub.f32 0.0, %v428_v55 }
 0x14f   : > { %v430_v57 = vmul.f32 1.442695, %v429_v56 }
 0x151   : > { %565 = vpow2.f32 %v430_v57 }
 0x157   : > { %v566_v58 = vpop.eup %565 }
 0x158   : > { %v432_v59 = vadd.f32 1.0, %v566_v58 }
 0x15a   : > { %567 = vrcp.f32 %v432_v59 }
 0x160   : > { %v568_v60 = vpop.eup %567 }
 0x161   : > { %434 = vst [vmem:[%s270_s21] sm:$0x1] %v568_v60 }
 0x162   : > { %596 = shalt.err (!%p593_p3)
}
 0x163   : > { %522 = dma.vmem_to_hbm [thread:$0]  (%p715_p5), %s447_s22, 16, %s449_s23, %s436_s24  }
 0x164 PF: > { %p528_p4 = scmp.ge.s32.totalorder %s631_s29, 2  ;;  %s460_s16 = sand.u32 1, %s619_s26  }
 0x165   : > { %s461_s17 = scalar_lea.sflag [#allocation4], %s460_s16 }
 0x166   : > { %p525_p7 = pnand %p528_p4, %p719_p6 }
 0x168   : > { %p526_p8 = pneg %p525_p7 }
 0x16a   : > { %614 = dma.done.wait (%p526_p8), %s461_s17, 16  }
 0x16b   : > { %616 = vsyncadd (%p526_p8), %s461_s17, 4294967280  ;;  %p19_p9 = scmp.ge.s32.totalorder %s702_s8, 4   ;;  %s818_s26 = smov %s623_s27 }
 0x16c   : > { %s819_s27 = smov %s627_s28  ;;  %s820_s28 = smov %s713_s11 }
 0x16d   : > { %s821_s29 = smov %s702_s8  ;;  %21 = sbr.rel (!%p19_p9) target bundleno = 6 (0x6), region = 83 }
 0x172   :  { %466 = vsyncpa [#allocation4], 1 }
 0x173   :  { %468 = vsyncpa [#allocation4 + $0x1], 1 }

</bundles_post_ra>
